<compile_context>
chip_gen: v5e
topology: v5e:2x2
jax: 0.10.0
libtpu: 0.0.40
codegen_flags: <defaults>
</compile_context>

<pallas_src>
import numpy as np
import jax
import jax.numpy as jnp
from jax.experimental import pallas as pl
from jax.experimental.pallas import tpu as pltpu

NEG_SLOPE_ATTEN = 0.2    # GATconv.atten_act = LeakyReLU(0.2)
NEG_SLOPE_ACT = 0.01     # GATconv.act = LeakyReLU() default slope
BN_EPS = 1e-5
VMEM_LIMIT_BYTES = 64 * 1024 * 1024   # raise default scoped limit (<= physical on all gens)


def _leaky_relu(x, slope):
    return jnp.where(x >= 0, x, slope * x)


def _round_up(n, m):
    return ((n + m - 1) // m) * m


# -----------------------------------------------------------------------------
# Kernel A: v2e mean aggregation (1/deg pre-folded into H^T), reduced over node
# tiles into an f32 (te, Cin_p) accumulator; finalize projects through the folded
# theta/BN weight and applies the per-edge attention score.
#   grid = (edge tiles [parallel], node tiles [arbitrary reduction])
# -----------------------------------------------------------------------------
def v2e_score_kernel(x_ref, ht_ref, w_ref, b_ref, we_ref, sy_ref, acc_ref):
    k = pl.program_id(1)

    @pl.when(k == 0)
    def _():
        acc_ref[...] = jnp.zeros_like(acc_ref)

    # partial mean over edge members: (1/deg * H^T)[e-tile, n-tile] @ X[n-tile]
    acc_ref[...] += jnp.dot(ht_ref[...], x_ref[...],
                            preferred_element_type=jnp.float32)

    @pl.when(k == pl.num_programs(1) - 1)
    def _():
        # project AFTER the mean (mean-then-linear == linear-then-mean), f32 matmul
        y = jnp.dot(acc_ref[...], w_ref[...],
                    preferred_element_type=jnp.float32) + b_ref[...]
        # atten_e as VPU broadcast-multiply + lane reduction (no width-1 MXU matvec)
        alpha = jnp.sum(y * we_ref[...], axis=-1, keepdims=True)      # (te, 1)
        score = jnp.clip(_leaky_relu(alpha, NEG_SLOPE_ATTEN), 0.0, 5.0)
        sy_ref[...] = (score * y).astype(sy_ref.dtype)


# -----------------------------------------------------------------------------
# Kernel B: weighted e2v sum (a1/a2/a3 pre-folded into H columns) + activation,
# independent node tiles ("parallel").
# -----------------------------------------------------------------------------
def e2v_kernel(h_ref, sy_ref, x_out_ref):
    x_out_ref[...] = _leaky_relu(
        jnp.dot(h_ref[...], sy_ref[...], preferred_element_type=jnp.float32),
        NEG_SLOPE_ACT)


def init_params(key, in_channels, out_channels):
    k1, k2, k3, _ = jax.random.split(key, 4)
    bound = 1.0 / np.sqrt(in_channels)
    return {
        "theta_w": jax.random.uniform(k1, (out_channels, in_channels),
                                      jnp.float32, -bound, bound),
        "theta_b": jax.random.uniform(k2, (out_channels,), jnp.float32, -bound, bound),
        # BatchNorm1d fresh-init running stats / affine (eval mode)
        "bn_gamma": jnp.ones((out_channels,), jnp.float32),
        "bn_beta": jnp.zeros((out_channels,), jnp.float32),
        "bn_mean": jnp.zeros((out_channels,), jnp.float32),
        "bn_var": jnp.ones((out_channels,), jnp.float32),
        # atten_e: Linear(out_channels -> 1, bias=False)
        "atten_e_w": jax.random.uniform(k3, (1, out_channels), jnp.float32,
                                        -1.0 / np.sqrt(out_channels),
                                        1.0 / np.sqrt(out_channels)),
        # a1, a2, a3 initialized to ones (as in the module)
        "a": jnp.ones((3,), jnp.float32),
    }


def prepare_hyperkcp(params, h1, h2, h3, *, node_tile=512, edge_tile=512):
    """One-time graph + parameter folding / padding.

    Re-run only if the hypergraph or the parameters change; the outputs are reused
    across forward calls (graph-constant HBM traffic is paid once).
    """
    N = h1.shape[0]
    cout, cin = params["theta_w"].shape
    e1, e2, e3 = h1.shape[1], h2.shape[1], h3.shape[1]
    e_cat = e1 + e2 + e3

    cin_p = _round_up(cin, 128)
    cout_p = _round_up(cout, 128)

    # --- node tiling: keep tiles lane/sublane dense (multiples of 128) ----------
    n_p = _round_up(N, 128)
    if n_p <= node_tile:
        tn = n_p                      # single tile; full-dim block, 128-aligned
    else:
        assert node_tile % 128 == 0, "node_tile must be a multiple of 128 when tiling"
        n_p = _round_up(N, node_tile)
        tn = node_tile

    # --- edge tiling: parallel axis (megacore on v7x), bounds per-core VMEM -----
    e_p = _round_up(e_cat, 128)
    if e_p <= edge_tile:
        te = e_p
    else:
        assert edge_tile % 128 == 0, "edge_tile must be a multiple of 128 when tiling"
        e_p = _round_up(e_cat, edge_tile)
        te = edge_tile

    # --- fold eval-BatchNorm + theta bias into one weight and one bias ----------
    bn_scale = params["bn_gamma"] / jnp.sqrt(params["bn_var"] + BN_EPS)
    bn_shift = params["bn_beta"] - params["bn_mean"] * bn_scale
    w_folded = params["theta_w"].T * bn_scale[None, :]               # (Cin, Cout)
    b_folded = params["theta_b"] * bn_scale + bn_shift               # (Cout,)

    w_p = jnp.zeros((cin_p, cout_p), jnp.float32).at[:cin, :cout].set(w_folded)
    b_p = jnp.zeros((1, cout_p), jnp.float32).at[0, :cout].set(b_folded)
    we_p = jnp.zeros((1, cout_p), jnp.float32).at[0, :cout].set(params["atten_e_w"][0])

    # --- fused 3-group incidence; fold 1/deg into H^T (kernel A) and a1/a2/a3 ---
    # --- into H columns (kernel B) so no lane-width-1 per-edge operands remain --
    h_cat = jnp.concatenate([h1, h2, h3], axis=1)                    # (N, E_cat)
    deg = jnp.sum(h_cat, axis=0)
    inv_deg = jnp.where(deg > 0, 1.0 / jnp.maximum(deg, 1.0), 0.0)   # empty-edge safe

    a = params["a"]
    a_vec = jnp.concatenate([jnp.full((e1,), a[0], jnp.float32),
                             jnp.full((e2,), a[1], jnp.float32),
                             jnp.full((e3,), a[2], jnp.float32)])

    ht_scaled = jnp.zeros((e_p, n_p), jnp.float32).at[:e_cat, :N].set(
        h_cat.T * inv_deg[:, None])                                  # (E_p, N_p)
    h_scaled = jnp.zeros((n_p, e_p), jnp.float32).at[:N, :e_cat].set(
        h_cat * a_vec[None, :])                                      # (N_p, E_p)

    return {
        "N": N, "cin": cin, "cout": cout,
        "n_p": n_p, "tn": tn, "cin_p": cin_p, "cout_p": cout_p,
        "e_p": e_p, "te": te,
        "w_p": w_p, "b_p": b_p, "we_p": we_p,
        # bf16 H entries are no longer exact 0/1 (scales folded in): ~0.4% rel err.
        "ht_bf": ht_scaled.astype(jnp.bfloat16),
        "h_bf": h_scaled.astype(jnp.bfloat16),
        "a": a,
    }


def hyperkcp_forward(x, prep, edge, new_edge):
    """Returns (sim, sim_new, a, X) matching HyperKCP.forward (eval mode)."""
    N, cin, cout = prep["N"], prep["cin"], prep["cout"]
    n_p, tn = prep["n_p"], prep["tn"]
    cin_p, cout_p = prep["cin_p"], prep["cout_p"]
    e_p, te = prep["e_p"], prep["te"]
    n_tiles = n_p // tn
    e_tiles = e_p // te

    # per-call input padding (X changes between calls; everything else is in prep)
    x_bf = jnp.zeros((n_p, cin_p), jnp.bfloat16).at[:N, :cin].set(
        x.astype(jnp.bfloat16))

    # ---------------- kernel A: edge-parallel x node-reduction grid --------------
    sy = pl.pallas_call(
        v2e_score_kernel,
        out_shape=jax.ShapeDtypeStruct((e_p, cout_p), jnp.bfloat16),
        grid=(e_tiles, n_tiles),
        in_specs=[
            pl.BlockSpec((tn, cin_p), lambda e, k: (k, 0)),      # X node tile (bf16)
            pl.BlockSpec((te, tn), lambda e, k: (e, k)),         # (1/deg)*H^T tile (bf16)
            pl.BlockSpec((cin_p, cout_p), lambda e, k: (0, 0)),  # folded theta/BN weight
            pl.BlockSpec((1, cout_p), lambda e, k: (0, 0)),      # folded bias
            pl.BlockSpec((1, cout_p), lambda e, k: (0, 0)),      # atten_e weight row
        ],
        out_specs=pl.BlockSpec((te, cout_p), lambda e, k: (e, 0)),
        scratch_shapes=[pltpu.VMEM((te, cin_p), jnp.float32)],
        compiler_params=pltpu.CompilerParams(
            dimension_semantics=("parallel", "arbitrary"),
            vmem_limit_bytes=VMEM_LIMIT_BYTES),
    )(x_bf, prep["ht_bf"], prep["w_p"], prep["b_p"], prep["we_p"])

    # ---------------- kernel B: e2v weighted sum + activation, per node tile -----
    x_out_p = pl.pallas_call(
        e2v_kernel,
        out_shape=jax.ShapeDtypeStruct((n_p, cout_p), jnp.float32),
        grid=(n_tiles,),
        in_specs=[
            pl.BlockSpec((tn, e_p), lambda i: (i, 0)),           # a*H node tile (bf16)
            pl.BlockSpec((e_p, cout_p), lambda i: (0, 0)),       # score * Y (bf16)
        ],
        out_specs=pl.BlockSpec((tn, cout_p), lambda i: (i, 0)),
        compiler_params=pltpu.CompilerParams(
            dimension_semantics=("parallel",),
            vmem_limit_bytes=VMEM_LIMIT_BYTES),
    )(prep["h_bf"], sy)

    # Pair similarity on the lane-dense padded output (zero padding columns add
    # nothing to the dot product); plain JAX gather + fused reduce.
    sim = jnp.sum(x_out_p[edge[0]] * x_out_p[edge[1]], axis=-1)
    sim_new = jnp.sum(x_out_p[new_edge[0]] * x_out_p[new_edge[1]], axis=-1)
    x_out = x_out_p[:N, :cout]                                   # strip padding
    return sim, sim_new, prep["a"], x_out


def _reference_forward(x, params, h1, h2, h3, edge, new_edge):
    """Pure-JAX reference for correctness checking."""
    xt = x @ params["theta_w"].T + params["theta_b"]
    scale = params["bn_gamma"] / jnp.sqrt(params["bn_var"] + BN_EPS)
    xt = (xt - params["bn_mean"]) * scale + params["bn_beta"]
    we = params["atten_e_w"].T

    def group(h):
        y = (h.T @ xt) / jnp.sum(h, axis=0, keepdims=True).T
        alpha = y @ we
        score = jnp.clip(jnp.where(alpha >= 0, alpha, NEG_SLOPE_ATTEN * alpha), 0.0, 5.0)
        return h @ (score * y)

    a = params["a"]
    xo = a[0] * group(h1) + a[1] * group(h2) + a[2] * group(h3)
    xo = jnp.where(xo >= 0, xo, NEG_SLOPE_ACT * xo)
    sim = jnp.sum(xo[edge[0]] * xo[edge[1]], axis=-1)
    sim_new = jnp.sum(xo[new_edge[0]] * xo[new_edge[1]], axis=-1)
    return sim, sim_new, a, xo


def _make_incidence(key, n_vertices, n_edges, p=0.4):
    h = jax.random.bernoulli(key, p, (n_vertices, n_edges)).astype(jnp.float32)
    # guarantee every hyperedge has at least one incident vertex
    cols = jnp.arange(n_edges)
    h = h.at[cols % n_vertices, cols].set(1.0)
    return h


if __name__ == "__main__":
    N = 600           # number of vertices (exercises node tiling + padding)
    IN_CH = 32
    OUT_CH = 16
    NE = 48           # hyperedges per group (E_cat = 144 -> 2 edge tiles of 128)
    N_EDGE = 8        # query edges
    N_NEW_EDGE = 6

    key = jax.random.PRNGKey(0)
    kx, kp, kh1, kh2, kh3, ke, kn = jax.random.split(key, 7)

    x = jax.random.normal(kx, (N, IN_CH), jnp.float32)
    params = init_params(kp, IN_CH, OUT_CH)
    h1 = _make_incidence(kh1, N, NE)   # 'hier'
    h2 = _make_incidence(kh2, N, NE)   # 'co-occurence'
    h3 = _make_incidence(kh3, N, NE)   # 'citation'
    edge = jax.random.randint(ke, (2, N_EDGE), 0, N, jnp.int32)
    new_edge = jax.random.randint(kn, (2, N_NEW_EDGE), 0, N, jnp.int32)

    # small tiles here so the demo exercises the 2-D (edge-parallel x node-reduction)
    # grid; production defaults are node_tile=512 / edge_tile=512.
    prep = prepare_hyperkcp(params, h1, h2, h3, node_tile=256, edge_tile=128)
    sim, sim_new, a, x_out = hyperkcp_forward(x, prep, edge, new_edge)
    jax.block_until_ready((sim, sim_new, x_out))

    # sanity check against pure-JAX reference (loose tol: bf16 MXU inputs)
    r_sim, r_sim_new, _, r_x = _reference_forward(x, params, h1, h2, h3, edge, new_edge)
    np.testing.assert_allclose(np.asarray(x_out), np.asarray(r_x), rtol=5e-2, atol=5e-2)
    np.testing.assert_allclose(np.asarray(sim), np.asarray(r_sim), rtol=5e-2, atol=5e-2)
    np.testing.assert_allclose(np.asarray(sim_new), np.asarray(r_sim_new),
                               rtol=5e-2, atol=5e-2)

    print("KERNEL_OK")
</pallas_src>

<mosaic_0001>
module attributes {stable_mosaic.version = 11 : i64} {
  func.func @v2e_score_kernel(%arg0: i32, %arg1: i32, %arg2: memref<256x128xbf16, #tpu.memory_space<vmem>>, %arg3: memref<128x256xbf16, #tpu.memory_space<vmem>>, %arg4: memref<128x128xf32, #tpu.memory_space<vmem>>, %arg5: memref<1x128xf32, #tpu.memory_space<vmem>>, %arg6: memref<1x128xf32, #tpu.memory_space<vmem>>, %arg7: memref<128x128xbf16, #tpu.memory_space<vmem>>, %arg8: memref<128x128xf32, #tpu.memory_space<vmem>>) attributes {dimension_semantics = [#tpu.dimension_semantics<parallel>, #tpu.dimension_semantics<arbitrary>], iteration_bounds = array<i64: 2, 3>, scalar_prefetch = 0 : i64, scratch_operands = 1 : i64, tpu.core_type = #tpu.core_type<tc>, window_params = [{transform_indices = @transform_0, window_bounds = array<i64: 256, 128>}, {transform_indices = @transform_1, window_bounds = array<i64: 128, 256>}, {pipeline_mode = #tpu.pipeline_mode<synchronous>, transform_indices = @transform_2, window_bounds = array<i64: 128, 128>}, {pipeline_mode = #tpu.pipeline_mode<synchronous>, transform_indices = @transform_3, window_bounds = array<i64: 1, 128>}, {pipeline_mode = #tpu.pipeline_mode<synchronous>, transform_indices = @transform_4, window_bounds = array<i64: 1, 128>}, {transform_indices = @transform_5, window_bounds = array<i64: 128, 128>}]} {
    %c0_i32 = arith.constant 0 : i32
    %0 = arith.cmpi eq, %arg1, %c0_i32 : i32
    %1 = arith.extui %0 : i1 to i32
    %c0_i32_0 = arith.constant 0 : i32
    %2 = arith.cmpi ne, %1, %c0_i32_0 : i32
    scf.if %2 {
      %cst_9 = arith.constant 0.000000e+00 : f32
      %12 = vector.broadcast %cst_9 : f32 to vector<128x128xf32>
      %c0_10 = arith.constant 0 : index
      %c0_11 = arith.constant 0 : index
      %13 = vector.load %arg8[%c0_10, %c0_11] : memref<128x128xf32, #tpu.memory_space<vmem>>, vector<128x128xf32>
      tpu.vector_store %arg8[%c0_10, %c0_11], %12 {strides = array<i32>} : memref<128x128xf32, #tpu.memory_space<vmem>>, vector<128x128xf32>,
    } else {
    }
    %c0 = arith.constant 0 : index
    %c0_1 = arith.constant 0 : index
    %3 = vector.load %arg8[%c0, %c0_1] : memref<128x128xf32, #tpu.memory_space<vmem>>, vector<128x128xf32>
    %c0_2 = arith.constant 0 : index
    %c0_3 = arith.constant 0 : index
    %4 = vector.load %arg3[%c0_2, %c0_3] : memref<128x256xbf16, #tpu.memory_space<vmem>>, vector<128x256xbf16>
    %c0_4 = arith.constant 0 : index
    %c0_5 = arith.constant 0 : index
    %5 = vector.load %arg2[%c0_4, %c0_5] : memref<256x128xbf16, #tpu.memory_space<vmem>>, vector<256x128xbf16>
    %cst = arith.constant dense<0.000000e+00> : vector<128x128xf32>
    %6 = tpu.matmul %4, %5, %cst {dimension_numbers = #tpu.dot_dimension_numbers<[1], [0], [0], [1], [0, 0, 1, 1], [], []>} : vector<128x256xbf16>, vector<256x128xbf16>, vector<128x128xf32> -> vector<128x128xf32>
    %7 = arith.addf %3, %6 : vector<128x128xf32>
    %c0_6 = arith.constant 0 : index
    %c0_7 = arith.constant 0 : index
    %8 = vector.load %arg8[%c0_6, %c0_7] : memref<128x128xf32, #tpu.memory_space<vmem>>, vector<128x128xf32>
    tpu.vector_store %arg8[%c0_6, %c0_7], %7 {strides = array<i32>} : memref<128x128xf32, #tpu.memory_space<vmem>>, vector<128x128xf32>,
    %c2_i32 = arith.constant 2 : i32
    %9 = arith.cmpi eq, %arg1, %c2_i32 : i32
    %10 = arith.extui %9 : i1 to i32
    %c0_i32_8 = arith.constant 0 : i32
    %11 = arith.cmpi ne, %10, %c0_i32_8 : i32
    scf.if %11 {
      %c0_9 = arith.constant 0 : index
      %c0_10 = arith.constant 0 : index
      %12 = vector.load %arg8[%c0_9, %c0_10] : memref<128x128xf32, #tpu.memory_space<vmem>>, vector<128x128xf32>
      %c0_11 = arith.constant 0 : index
      %c0_12 = arith.constant 0 : index
      %13 = vector.load %arg4[%c0_11, %c0_12] : memref<128x128xf32, #tpu.memory_space<vmem>>, vector<128x128xf32>
      %cst_13 = arith.constant dense<0.000000e+00> : vector<128x128xf32>
      %14 = tpu.matmul %12, %13, %cst_13 {dimension_numbers = #tpu.dot_dimension_numbers<[1], [0], [0], [1], [0, 0, 1, 1], [], []>} : vector<128x128xf32>, vector<128x128xf32>, vector<128x128xf32> -> vector<128x128xf32>
      %c0_14 = arith.constant 0 : index
      %c0_15 = arith.constant 0 : index
      %15 = vector.load %arg5[%c0_14, %c0_15] : memref<1x128xf32, #tpu.memory_space<vmem>>, vector<1x128xf32>
      %16 = vector.broadcast %15 : vector<1x128xf32> to vector<128x128xf32>
      %17 = arith.addf %14, %16 : vector<128x128xf32>
      %c0_16 = arith.constant 0 : index
      %c0_17 = arith.constant 0 : index
      %18 = vector.load %arg6[%c0_16, %c0_17] : memref<1x128xf32, #tpu.memory_space<vmem>>, vector<1x128xf32>
      %19 = vector.broadcast %18 : vector<1x128xf32> to vector<128x128xf32>
      %20 = arith.mulf %17, %19 : vector<128x128xf32>
      %cst_18 = arith.constant dense<0.000000e+00> : vector<128xf32>
      %21 = vector.multi_reduction <add>, %20, %cst_18 [1] : vector<128x128xf32> to vector<128xf32>
      %22 = vector.shape_cast %21 : vector<128xf32> to vector<128x1xf32>
      %cst_19 = arith.constant 0.000000e+00 : f32
      %23 = vector.broadcast %cst_19 : f32 to vector<128x1xf32>
      %24 = arith.cmpf oge, %22, %23 : vector<128x1xf32>
      %cst_20 = arith.constant 2.000000e-01 : f32
      %25 = vector.broadcast %cst_20 : f32 to vector<128x1xf32>
      %26 = arith.mulf %25, %22 : vector<128x1xf32>
      %27 = arith.select %24, %22, %26 : vector<128x1xi1>, vector<128x1xf32>
      %cst_21 = arith.constant 0.000000e+00 : f32
      %cst_22 = arith.constant 5.000000e+00 : f32
      %28 = vector.broadcast %cst_21 : f32 to vector<128x1xf32>
      %29 = arith.maximumf %28, %27 : vector<128x1xf32>
      %30 = vector.broadcast %cst_22 : f32 to vector<128x1xf32>
      %31 = arith.minimumf %30, %29 : vector<128x1xf32>
      %32 = vector.broadcast %31 : vector<128x1xf32> to vector<128x128xf32>
      %33 = arith.mulf %32, %17 : vector<128x128xf32>
      %34 = arith.truncf %33 : vector<128x128xf32> to vector<128x128xbf16>
      %c0_23 = arith.constant 0 : index
      %c0_24 = arith.constant 0 : index
      %35 = vector.load %arg7[%c0_23, %c0_24] : memref<128x128xbf16, #tpu.memory_space<vmem>>, vector<128x128xbf16>
      tpu.vector_store %arg7[%c0_23, %c0_24], %34 {strides = array<i32>} : memref<128x128xbf16, #tpu.memory_space<vmem>>, vector<128x128xbf16>,
    } else {
    }
    return
  }
  func.func @transform_0(%arg0: i32, %arg1: i32) -> (i32, i32) {
    %c0_i32 = arith.constant 0 : i32
    %c0_i32_0 = arith.constant 0 : i32
    return %arg1, %c0_i32 : i32, i32
  }
  func.func @transform_1(%arg0: i32, %arg1: i32) -> (i32, i32) {
    %c0_i32 = arith.constant 0 : i32
    return %arg0, %arg1 : i32, i32
  }
  func.func @transform_2(%arg0: i32, %arg1: i32) -> (i32, i32) {
    %c0_i32 = arith.constant 0 : i32
    %c0_i32_0 = arith.constant 0 : i32
    %c0_i32_1 = arith.constant 0 : i32
    return %c0_i32, %c0_i32_0 : i32, i32
  }
  func.func @transform_3(%arg0: i32, %arg1: i32) -> (i32, i32) {
    %c0_i32 = arith.constant 0 : i32
    %c0_i32_0 = arith.constant 0 : i32
    %c0_i32_1 = arith.constant 0 : i32
    return %c0_i32, %c0_i32_0 : i32, i32
  }
  func.func @transform_4(%arg0: i32, %arg1: i32) -> (i32, i32) {
    %c0_i32 = arith.constant 0 : i32
    %c0_i32_0 = arith.constant 0 : i32
    %c0_i32_1 = arith.constant 0 : i32
    return %c0_i32, %c0_i32_0 : i32, i32
  }
  func.func @transform_5(%arg0: i32, %arg1: i32) -> (i32, i32) {
    %c0_i32 = arith.constant 0 : i32
    %c0_i32_0 = arith.constant 0 : i32
    return %arg0, %c0_i32 : i32, i32
  }
}

</mosaic_0001>

<bundles_post_ra>
// kernel: tpu_custom_call.1
= control target key start
LH: loop header
LB: loop body
LE: loop exit
PB: predicated region body
PF: predicated region fallthrough
CT: control target
= control target key end

     0   :  { %s2316_s0 = inlined_call_operand.hbm [shape: bf16[768,128], index: 0, kind: input, shape index: {}]   ;;  %s2317_s1 = inlined_call_operand.hbm [shape: bf16[256,768], index: 1, kind: input, shape index: {}]   ;;  %s2318_s2 = inlined_call_operand.hbm [shape: f32[128,128], index: 2, kind: input, shape index: {}]   ;;  %s2319_s3 = inlined_call_operand.vmem [shape: f32[1,128], index: 3, kind: input, shape index: {}]   ;;  %s2320_s4 = inlined_call_operand.vmem [shape: f32[1,128], index: 4, kind: input, shape index: {}]   ;;  %s2321_s5 = inlined_call_operand.hbm [shape: bf16[256,128], index: 5, kind: output, shape index: {}]  }
   0x1   :  { %2334 = sst [smem:[#allocation25_spill]] %s2316_s0 }
   0x2   :  { %2335 = sst [smem:[#allocation26_spill]] %s2318_s2 }
   0x3   :  { %2336 = sst [smem:[#allocation27_spill]] %s2319_s3 }
   0x4   :  { %2337 = sst [smem:[#allocation28_spill]] %s2320_s4 }
   0x5   :  { %2338 = sst [smem:[#allocation29_spill]] %s2321_s5 }
   0x6   :  { %10 = vsyncpa [#allocation4], 0 }
   0x7   :  { %12 = vsyncpa [#allocation4 + $0x1], 0 }
   0x8   :  { %13 = vsyncpa [#allocation7], 0 }
   0x9   :  { %15 = vsyncpa [#allocation7 + $0x1], 0 }
   0xa   :  { %16 = vsyncpa [#allocation5], 0 }
   0xb   :  { %18 = vsyncpa [#allocation5 + $0x1], 0  ;;  %s1870_s18 = smov 0   ;;  %s1872_s19 = smov 0  }
   0xc   :  { %s1874_s20 = smov 0   ;;  %s1876_s21 = smov 0  }
   0xd   :  { %s1878_s22 = smov 0   ;;  %s1880_s23 = smov 0  }
   0xe   :  { %s1882_s24 = smov 0   ;;  %s1884_s25 = smov 0  }
   0xf   :  { %s1886_s26 = smov 0   ;;  %s1888_s27 = smov 0  }
  0x10   :  { %s1890_s28 = smov 0   ;;  %s1892_s29 = smov 0  }
  0x11   :  { %s1894_s30 = smov 0   ;;  %s1896_s6 = smov 0  }
  0x12 LB: > { %2339 = sst [smem:[#allocation14_spill]] %s1777_s18  ;;  %s1939_s7 = sadd.s32 4294967295, %s1829_s6   ;;  %s1829_s6 = sphi %s1896_s6, %s24_s6   ;;  %s1825_s30 = sphi %s1894_s30, %s2387_s30   ;;  %s1821_s29 = sphi %s1892_s29, %s2375_s29   ;;  %s1817_s28 = sphi %s1890_s28, %s2386_s28   ;;  %s1813_s27 = sphi %s1888_s27, %s2374_s27   ;;  %s1809_s26 = sphi %s1886_s26, %s2385_s26   ;;  %s1805_s25 = sphi %s1884_s25, %s2384_s25   ;;  %s1801_s24 = sphi %s1882_s24, %s2383_s24   ;;  %s1797_s23 = sphi %s1880_s23, %s2382_s23   ;;  %s1793_s22 = sphi %s1878_s22, %s2381_s22   ;;  %s1789_s21 = sphi %s1876_s21, %s2380_s21   ;;  %s1785_s20 = sphi %s1874_s20, %s2370_s20   ;;  %s1781_s19 = sphi %s1872_s19, %s2379_s19   ;;  %s1777_s18 = sphi %s1870_s18, %s2378_s18  }
  0x13   : > { %2340 = sst [smem:[#allocation15_spill]] %s1785_s20  ;;  %s1135_s8 = sadd.s32 4294967294, %s1829_s6  }
  0x14   : > { %2341 = sst [smem:[#allocation16_spill]] %s1809_s26  ;;  %p57_p0 = scmp.eq.s32.totalorder %s1939_s7, 0 }
  0x15   : > { %2342 = sst [smem:[#allocation17_spill]] %s1817_s28  ;;  %p84_p1 = scmp.ne.s32.totalorder %s1793_s22, %s1789_s21 }
  0x16   : > { %2343 = sst [smem:[#allocation18_spill]] %s1821_s29  ;;  %p170_p2 = scmp.ne.s32.totalorder %s1785_s20, %s1781_s19 }
  0x17   : > { %p171_p3 = scmp.eq.s32.totalorder %s1939_s7, 5  ;;  %p1949_p4 = por %p84_p1, %p57_p0 }
  0x18   : > { %p176_p5 = scmp.ne.s32.totalorder %s1781_s19, %s1777_s18  ;;  %p177_p7 = scmp.eq.s32.totalorder %s1135_s8, 5 }
  0x19   : > { %p1955_p6 = por %p171_p3, %p170_p2  ;;  %p1136_p8 = scmp.ge.s32.totalorder %s1829_s6, 1 }
  0x1a   : > { %p184_p9 = scmp.lt.s32.totalorder %s1829_s6, 7  ;;  %p1961_p10 = por %p177_p7, %p176_p5 }
  0x1b   : > { %s2345_s10 = scalar_select %p1955_p6, 1, 0 }
  0x1c   : > { %s2347_s11 = scalar_select %p1961_p10, 1, 0 }
  0x1d   : > { %2346 = sst [smem:[#allocation19_spill]] %s2345_s10  ;;  %p1965_p11 = pnand %p1136_p8, %p184_p9 }
  0x1e   : > { %2348 = sst [smem:[#allocation20_spill]] %s2347_s11  ;;  %s1831_s16 = smov [#allocation8]  }
  0x1f   : > { %s2350_s2 = sld [smem:[#allocation26_spill]]  ;;  %p1443_p12 = pneg %p1965_p11 }
  0x20   : > { %s197_s17 = sshll.u32 %s1831_s16, 4  ;;  %s2322_s21 = smov 128   ;;  %s198_s17 = int_to_ptr.vmem [resolvable:$true] %s197_s17 }
  0x21   : > { %p1444_p13 = pnand %p1443_p12, %p57_p0  ;;  %s2323_s8 = smov 8  }
  0x22   : > { %s33_s13 = sadd.s32 1, %s1821_s29  ;;  %s36_s14 = sadd.s32 1, %s1825_s30 }
  0x23   : > { %p34_p1 = scmp.ge.s32.totalorder %s33_s13, 3  ;;  %p50_p2 = scmp.ne.s32.totalorder %s1809_s26, %s1805_s25 }
  0x24   : > { %p51_p3 = scmp.eq.s32.totalorder %s1829_s6, 0  ;;  %p56_p9 = scmp.ne.s32.totalorder %s1805_s25, %s1801_s24 }
  0x25   : > { %s195_s15 = sshll.u32 %s2350_s2, 4  ;;  %s43_s2 = sadd.s32 1, %s1809_s26  ;;  %s196_s15 = int_to_ptr.hbm [resolvable:$true] %s195_s15 }
  0x26   : > { %1446 = dma.hbm_to_vmem [thread:$0]  (!%p1444_p13), %s196_s15, 2048, %s198_s17, [#allocation7], %s2322_s21, %s2322_s21, %s2323_s8  }
  0x27   : > { %s2389_s13 = smov (%p34_p1, %s33_s13), 0  ;;  %s2391_s14 = smov (!%p34_p1, %s36_s14), %s1825_s30 }
  0x28   : > { %2351 = sst [smem:[#allocation21_spill]] %s2389_s13  ;;  %s40_s16 = ssub.s32 %s1821_s29, %s2389_s13 }
  0x29   : > { %p1992_p5 = por %p51_p3, %p50_p2  ;;  %p38_p7 = scmp.ge.s32.totalorder %s2391_s14, 2 }
  0x2a   : > { %p41_p8 = scmp.eq.s32.totalorder %s40_s16, 0  ;;  %s160_s17 = sadd.s32 1, %s1785_s20 }
  0x2b   : > { %s2393_s14 = smov (%p38_p7, %s2391_s14), 0  ;;  %p2006_p12 = por %p57_p0, %p56_p9 }
  0x2c   : > { %2353 = sst [smem:[#allocation22_spill]] %s2393_s14  ;;  %s66_s13 = ssub.s32 %s1825_s30, %s2393_s14 }
  0x2d   : > { %s2002_s21 = scalar_select %p41_p8, %s1809_s26, %s43_s2  }
  0x2e   : > { %s68_s11 = sor.u32 %s66_s13, %s40_s16  ;;  %p158_p13 = scmp.eq.s32.totalorder %s66_s13, 0 }
  0x2f   : > { %2354 = sst [smem:[#allocation23_spill]] %s2002_s21  ;;  %p2012_p1 = scmp.eq.s32.totalorder %s68_s11, 0 }
  0x30   : > { %p1459_p2 = scmp.lt.s32.totalorder %s1829_s6, 6  ;;  %s217_s2 = sand.u32 1, %s1809_s26  }
  0x31   : > { %s2018_s24 = scalar_select %p158_p13, %s1785_s20, %s160_s17  }
  0x32   : > { %s1287_s21 = sshll.u32 %s1821_s29, 7  ;;  %s1139_s5 = sshll.u32 %s217_s2, 7 }
  0x33   : > { %2357 = sst [smem:[#allocation24_spill]] %s2018_s24  ;;  %s221_s16 = scalar_lea.vmem [#allocation3], %s1139_s5 }
  0x34   : > { %s2358_s0 = sld [smem:[#allocation25_spill]]  ;;  %s229_s17 = sshll.u32 %s221_s16, 4  ;;  %s230_s17 = int_to_ptr.vmem [resolvable:$true] %s229_s17 }
  0x35   : > { %p1448_p7 = pnand %p1459_p2, %p1992_p5  ;;  %s1144_s14 = sshll.u32 %s1821_s29, 1 }
  0x36   : > { %s218_s26 = scalar_lea.sflag [#allocation4], %s217_s2  ;;  %s1834_s24 = smov 64  }
  0x37   : > { %s1835_s20 = smov 4   ;;  %s239_s28 = sand.u32 1, %s1829_s6  }
  0x38   : > { %s71_s10 = sadd.s32 1, %s1797_s23  ;;  %p78_p8 = scmp.ne.s32.totalorder %s1797_s23, %s1793_s22 }
  0x39   : > { %s241_s5 = sand.u32 1, %s1797_s23   ;;  %s240_s18 = scalar_lea.sflag [#allocation7], %s239_s28 }
  0x3a   : > { %s226_s13 = scalar_lea.hbm %s2358_s0, %s1287_s21  ;;  %p80_p9 = por %p78_p8, %p51_p3 }
  0x3b   : > { %s227_s11 = sshll.u32 %s226_s13, 4  ;;  %s1432_s13 = smul.u32 96, %s1825_s30  ;;  %s228_s11 = int_to_ptr.hbm [resolvable:$true] %s227_s11 }
  0x3c   : > { %1450 = dma.hbm_to_vmem [thread:$0]  (!%p1448_p7), %s228_s11, 2048, %s230_s17, %s218_s26, %s1834_s24, %s1834_s24, %s1835_s20  }
  0x3d   : > { %s2037_s21 = scalar_select %p2012_p1, %s1797_s23, %s71_s10  }
  0x3e   : > { %s1142_s16 = sshll.u32 %s241_s5, 7  ;;  %p1451_p13 = pnand %p1459_p2, %p80_p9 }
  0x3f   : > { %s249_s15 = sadd.s32 %s1432_s13, %s1144_s14  ;;  %s243_s29 = scalar_lea.vmem [#allocation6], %s1142_s16 }
  0x40   : > { %s1146_s0 = sshll.u32 %s249_s15, 2  ;;  %s254_s2 = sshll.u32 %s243_s29, 4  ;;  %s255_s2 = int_to_ptr.vmem [resolvable:$true] %s254_s2 }
  0x41   : > { %s251_s20 = scalar_lea.hbm %s2317_s1, %s1146_s0  ;;  %s1836_s24 = smov 384  }
  0x42   : > { %s252_s26 = sshll.u32 %s251_s20, 4  ;;  %s2359_s11 = smov 8   ;;  %s253_s26 = int_to_ptr.hbm [resolvable:$true] %s252_s26 }
  0x43   : > { %s2360_s17 = smov 128   ;;  %266 = sbr.rel (%p1965_p11) target bundleno = 689 (0x2b1), region = 40 }
  0x44   : > { %1453 = dma.hbm_to_vmem [thread:$0]  (!%p1451_p13), %s253_s26, 2048, %s255_s2, %s240_s18, %s1836_s24, %s2360_s17, %s2359_s11  }
  0x45   : > { %s268_s14 = sand.u32 (!%p1965_p11), 1, %s1805_s25  }
  0x46   : > { %s1148_s10 = sshll.u32 (!%p1965_p11), %s268_s14, 7  ;;  %s269_s29 = scalar_lea.sflag (!%p1965_p11), [#allocation4], %s268_s14 }
  0x47   : > { %s2053_s5 = scalar_lea.vmem (!%p1965_p11), [#allocation3], %s1148_s10 }
  0x48   : > { %1760 = dma.done.wait (%p2006_p12), %s269_s29, 2048  }
  0x49   : > { %1762 = vsyncadd (%p2006_p12), %s269_s29, 4294965248  ;;  %s278_s0 = sand.u32 1, %s1939_s7   ;;  %s280_s3 = sand.u32 1, %s1793_s22  }
  0x4a   : > { %s1149_s4 = sshll.u32 %s280_s3, 7  ;;  %s279_s12 = scalar_lea.sflag [#allocation7], %s278_s0 }
  0x4b   : > { %s2061_s28 = scalar_lea.vmem [#allocation6], %s1149_s4 }
  0x4c   : > { %1764 = dma.done.wait (%p1949_p4), %s279_s12, 2048  }
  0x4d   : > { %1766 = vsyncadd (%p1949_p4), %s279_s12, 4294965248 }
  0x4e   : > { %1768 = dma.done.wait (%p57_p0), [#allocation7], 2048  }
  0x4f   : > { %1770 = vsyncadd (%p57_p0), [#allocation7], 4294965248  ;;  %s317_s8 = sand.u32 1, %s1781_s19   ;;  %p1152_p11 = scmp.ne.s32.totalorder %s1813_s27, 0 }
  0x50   : > { %s1151_s13 = sshll.u32 %s317_s8, 6 }
  0x51   : > { %s2074_s16 = scalar_lea.vmem [#allocation9], %s1151_s13  ;;  %327 = sbr.rel (%p1152_p11) target bundleno = 103 (0x67), region = 56 }
  0x56   : > { %v1837_v0 = vmov 0.0  }
  0x57   : > { %328 = vst [vmem:[#allocation2 + $0x30] sm:$0xff] %v1837_v0 }
  0x58   : > { %329 = vst [vmem:[#allocation2] sm:$0xff] %v1837_v0 }
  0x59   : > { %330 = vst [vmem:[#allocation2 + $0x58] sm:$0xff] %v1837_v0 }
  0x5a   : > { %331 = vst [vmem:[#allocation2 + $0x18] sm:$0xff] %v1837_v0 }
  0x5b   : > { %332 = vst [vmem:[#allocation2 + $0x50] sm:$0xff] %v1837_v0 }
  0x5c   : > { %333 = vst [vmem:[#allocation2 + $0x68] sm:$0xff] %v1837_v0 }
  0x5d   : > { %334 = vst [vmem:[#allocation2 + $0x8] sm:$0xff] %v1837_v0 }
  0x5e   : > { %335 = vst [vmem:[#allocation2 + $0x48] sm:$0xff] %v1837_v0 }
  0x5f   : > { %336 = vst [vmem:[#allocation2 + $0x40] sm:$0xff] %v1837_v0 }
  0x60   : > { %337 = vst [vmem:[#allocation2 + $0x20] sm:$0xff] %v1837_v0 }
  0x61   : > { %338 = vst [vmem:[#allocation2 + $0x10] sm:$0xff] %v1837_v0 }
  0x62   : > { %339 = vst [vmem:[#allocation2 + $0x38] sm:$0xff] %v1837_v0 }
  0x63   : > { %340 = vst [vmem:[#allocation2 + $0x60] sm:$0xff] %v1837_v0 }
  0x64   : > { %341 = vst [vmem:[#allocation2 + $0x70] sm:$0xff] %v1837_v0 }
  0x65   : > { %342 = vst [vmem:[#allocation2 + $0x78] sm:$0xff] %v1837_v0 }
  0x66   : > { %343 = vst [vmem:[#allocation2 + $0x28] sm:$0xff] %v1837_v0 }
  0x67 PF: > { %v1311_v1 = vld [vmem:[%s2053_s5 + $0x38] sm:$0xff]  ;;  %v1310_v3 = vld [vmem:[%s2053_s5 + $0x30] sm:$0xff]  ;;  %v1309_v5 = vld [vmem:[%s2053_s5 + $0x28] sm:$0xff]  ;;  %p1281_p0 = scmp.ne.s32.totalorder %s1813_s27, 2 }
  0x68   : > { %v1319_v2 = vld [vmem:[%s2053_s5 + $0x78] sm:$0xff]  ;;  %584 = vmatpush.bf16.msra.mxu0 %v1311_v1  ;;  %1368 = vmatpush.bf16.msra.mxu2 %v1311_v1  ;;  %v1318_v4 = vld [vmem:[%s2053_s5 + $0x70] sm:$0xff]  ;;  %v1317_v6 = vld [vmem:[%s2053_s5 + $0x68] sm:$0xff]  ;;  %s2361_s9 = sld [smem:[#allocation27_spill]] (!%p1281_p0) }
  0x69   : > { %633 = vmatpush.bf16.msra.mxu1 %v1319_v2  ;;  %1376 = vmatpush.bf16.msra.mxu3 %v1319_v2  ;;  %v1308_v7 = vld [vmem:[%s2053_s5 + $0x20] sm:$0xff]  ;;  %v1307_v9 = vld [vmem:[%s2053_s5 + $0x18] sm:$0xff]  ;;  %v1306_v11 = vld [vmem:[%s2053_s5 + $0x10] sm:$0xff]  ;;  %s2362_s20 = sld [smem:[#allocation28_spill]] (!%p1281_p0) }
  0x6a   : > { %v1316_v8 = vld [vmem:[%s2053_s5 + $0x60] sm:$0xff]  ;;  %v1315_v10 = vld [vmem:[%s2053_s5 + $0x58] sm:$0xff]  ;;  %v1314_v12 = vld [vmem:[%s2053_s5 + $0x50] sm:$0xff] }
  0x6b   : > { %v1305_v13 = vld [vmem:[%s2053_s5 + $0x8] sm:$0xff]  ;;  %v1304_v15 = vld [vmem:[%s2053_s5] sm:$0xff]  ;;  %v1163_v29 = vld [vmem:[%s2061_s28 + $0x10] sm:$0xf] }
  0x6c   : > { %585 = vmatpush.bf16.msra.mxu0 %v1310_v3  ;;  %1369 = vmatpush.bf16.msra.mxu2 %v1310_v3  ;;  %v1313_v14 = vld [vmem:[%s2053_s5 + $0x48] sm:$0xff]  ;;  %v1312_v16 = vld [vmem:[%s2053_s5 + $0x40] sm:$0xff]  ;;  %v1291_v30 = vld [vmem:[%s2061_s28 + $0x14] sm:$0xf0] }
  0x6d   : > { %634 = vmatpush.bf16.msra.mxu1 %v1318_v4  ;;  %1377 = vmatpush.bf16.msra.mxu3 %v1318_v4  ;;  %v1155_v17 = vld [vmem:[%s2061_s28] sm:$0xf]  ;;  %v1289_v18 = vld [vmem:[%s2061_s28 + $0x4] sm:$0xf0]  ;;  %v1288_v21 = vld [vmem:[%s2061_s28 + $0x4] sm:$0xf]  ;;  %v1164_v37 = vor.u32 %v1291_v30, %v1163_v29 }
  0x6e   : > { %v1187_v19 = vld [vmem:[%s2061_s28 + $0x40] sm:$0xf]  ;;  %v1297_v20 = vld [vmem:[%s2061_s28 + $0x44] sm:$0xf0]  ;;  %v1157_v22 = vld [vmem:[%s2061_s28 + $0x8] sm:$0xf0]  ;;  %v1156_v25 = vor.u32 %v1289_v18, %v1155_v17 }
  0x6f   : > { %v1296_v23 = vld [vmem:[%s2061_s28 + $0x44] sm:$0xf]  ;;  %v1189_v24 = vld [vmem:[%s2061_s28 + $0x48] sm:$0xf0]  ;;  %v1188_v26 = vor.u32 %v1297_v20, %v1187_v19  ;;  %v1160_v27 = vor.u32 %v1288_v21, %v1157_v22  ;;  %v1195_v31 = vld [vmem:[%s2061_s28 + $0x50] sm:$0xf] }
  0x70   : > { %586 = vmatpush.bf16.msra.mxu0 %v1309_v5  ;;  %1370 = vmatpush.bf16.msra.mxu2 %v1309_v5  ;;  %v1192_v28 = vor.u32 %v1296_v23, %v1189_v24  ;;  %v1299_v32 = vld [vmem:[%s2061_s28 + $0x54] sm:$0xf0]  ;;  %v1290_v33 = vld [vmem:[%s2061_s28 + $0x14] sm:$0xf]  ;;  %v1165_v34 = vld [vmem:[%s2061_s28 + $0x18] sm:$0xf0] }
  0x71   : > { %635 = vmatpush.bf16.msra.mxu1 %v1317_v6  ;;  %1378 = vmatpush.bf16.msra.mxu3 %v1317_v6  ;;  %v1298_v35 = vld [vmem:[%s2061_s28 + $0x54] sm:$0xf]  ;;  %v1197_v36 = vld [vmem:[%s2061_s28 + $0x58] sm:$0xf0]  ;;  %v1196_v38 = vor.u32 %v1299_v32, %v1195_v31  ;;  %v1168_v39 = vor.u32 %v1290_v33, %v1165_v34  ;;  %v1171_v41 = vld [vmem:[%s2061_s28 + $0x20] sm:$0xf] }
  0x72   : > { %v1200_v40 = vor.u32 %v1298_v35, %v1197_v36  ;;  %v1293_v42 = vld [vmem:[%s2061_s28 + $0x24] sm:$0xf0]  ;;  %v1203_v43 = vld [vmem:[%s2061_s28 + $0x60] sm:$0xf]  ;;  %v1292_v45 = vld [vmem:[%s2061_s28 + $0x24] sm:$0xf] }
  0x73   : > { %v1301_v44 = vld [vmem:[%s2061_s28 + $0x64] sm:$0xf0]  ;;  %v1173_v46 = vld [vmem:[%s2061_s28 + $0x28] sm:$0xf0]  ;;  %v1300_v47 = vld [vmem:[%s2061_s28 + $0x64] sm:$0xf]  ;;  %v1172_v49 = vor.u32 %v1293_v42, %v1171_v41 }
  0x74   : > { %587 = vmatpush.bf16.msra.mxu0 %v1308_v7  ;;  %1371 = vmatpush.bf16.msra.mxu2 %v1308_v7  ;;  %v1205_v48 = vld [vmem:[%s2061_s28 + $0x68] sm:$0xf0]  ;;  %v1204_v50 = vor.u32 %v1301_v44, %v1203_v43  ;;  %v1176_v51 = vor.u32 %v1292_v45, %v1173_v46  ;;  %v1179_v53 = vld [vmem:[%s2061_s28 + $0x30] sm:$0xf]  ;;  %v1295_v54 = vld [vmem:[%s2061_s28 + $0x34] sm:$0xf0] }
  0x75   : > { %636 = vmatpush.bf16.msra.mxu1 %v1316_v8  ;;  %1379 = vmatpush.bf16.msra.mxu3 %v1316_v8  ;;  %v1208_v52 = vor.u32 %v1300_v47, %v1205_v48  ;;  %v1211_v55 = vld [vmem:[%s2061_s28 + $0x70] sm:$0xf]  ;;  %v1303_v56 = vld [vmem:[%s2061_s28 + $0x74] sm:$0xf0]  ;;  %v1294_v57 = vld [vmem:[%s2061_s28 + $0x34] sm:$0xf]  ;;  %v1180_v61 = vor.u32 %v1295_v54, %v1179_v53 }
  0x76   : > { %v1181_v58 = vld [vmem:[%s2061_s28 + $0x38] sm:$0xf0]  ;;  %v1302_v59 = vld [vmem:[%s2061_s28 + $0x74] sm:$0xf]  ;;  %v1212_v62 = vor.u32 %v1303_v56, %v1211_v55  ;;  %v352_v7 = vld [vmem:[#allocation2 + $0x40] sm:$0xff] }
  0x77   : > { %v1213_v60 = vld [vmem:[%s2061_s28 + $0x78] sm:$0xf0]  ;;  %v1184_v63 = vor.u32 %v1294_v57, %v1181_v58  ;;  %v344_v2 = vld [vmem:[#allocation2 + $0x30] sm:$0xff]  ;;  %v353_v17 = vld [vmem:[#allocation2 + $0x20] sm:$0xff] }
  0x78   : > { %588 = vmatpush.bf16.msra.mxu0 %v1307_v9  ;;  %1372 = vmatpush.bf16.msra.mxu2 %v1307_v9  ;;  %v1216_v0 = vor.u32 %v1302_v59, %v1213_v60  ;;  %v346_v21 = vld [vmem:[#allocation2 + $0x58] sm:$0xff]  ;;  %v348_v41 = vld [vmem:[#allocation2 + $0x50] sm:$0xff]  ;;  %v356_v47 = vld [vmem:[#allocation2 + $0x60] sm:$0xff] }
  0x79   : > { %637 = vmatpush.bf16.msra.mxu1 %v1315_v10  ;;  %1380 = vmatpush.bf16.msra.mxu3 %v1315_v10  ;;  %v347_v31 = vld [vmem:[#allocation2 + $0x18] sm:$0xff]  ;;  %v357_v57 = vld [vmem:[#allocation2 + $0x70] sm:$0xff] }
  0x7c   : > { %589 = vmatpush.bf16.msra.mxu0 %v1306_v11  ;;  %1373 = vmatpush.bf16.msra.mxu2 %v1306_v11  ;;  %v345_v11 = vld [vmem:[#allocation2] sm:$0xff] }
  0x7d   : > { %638 = vmatpush.bf16.msra.mxu1 %v1314_v12  ;;  %1381 = vmatpush.bf16.msra.mxu3 %v1314_v12 }
  0x80   : > { %590 = vmatpush.bf16.msra.mxu0 %v1305_v13  ;;  %1374 = vmatpush.bf16.msra.mxu2 %v1305_v13 }
  0x81   : > { %639 = vmatpush.bf16.msra.mxu1 %v1313_v14  ;;  %1382 = vmatpush.bf16.msra.mxu3 %v1313_v14 }
  0x84   : > { %591 = vmatpush.bf16.msra.mxu0 %v1304_v15  ;;  %1375 = vmatpush.bf16.msra.mxu2 %v1304_v15 }
  0x85   : > { %640 = vmatpush.bf16.msra.mxu1 %v1312_v16  ;;  %1383 = vmatpush.bf16.msra.mxu3 %v1312_v16 }
  0x87   : > { %592 = vmatmul.bf16.vlgmr.msra.gmra.mxu0 %v1156_v25  ;;  %612 = vmatmul.bf16.vlgmr.msra.gmra.mxu2 %v1188_v26 }
  0x88   : > { %641 = vmatmul.bf16.vlgmr.msra.gmra.mxu1 %v1160_v27  ;;  %661 = vmatmul.bf16.vlgmr.msra.gmra.mxu3 %v1192_v28  ;;  %v354_v27 = vld [vmem:[#allocation2 + $0x10] sm:$0xff] }
  0x97   : > { %597 = vmatmul.bf16.gmra.mxu0 %v1164_v37  ;;  %617 = vmatmul.bf16.gmra.mxu2 %v1196_v38  ;;  %v355_v37 = vld [vmem:[#allocation2 + $0x38] sm:$0xff] }
  0x98   : > { %646 = vmatmul.bf16.gmra.mxu1 %v1168_v39  ;;  %666 = vmatmul.bf16.gmra.mxu3 %v1200_v40 }
  0xa7   : > { %602 = vmatmul.bf16.gmra.mxu0 %v1172_v49  ;;  %622 = vmatmul.bf16.gmra.mxu2 %v1204_v50 }
  0xa8   : > { %651 = vmatmul.bf16.gmra.mxu1 %v1176_v51  ;;  %671 = vmatmul.bf16.gmra.mxu3 %v1208_v52  ;;  %v349_v51 = vld [vmem:[#allocation2 + $0x68] sm:$0xff] }
  0xb7   : > { %607 = vmatmul.bf16.gmra.mxu0 %v1180_v61  ;;  %627 = vmatmul.bf16.gmra.mxu2 %v1212_v62  ;;  %v350_v61 = vld [vmem:[#allocation2 + $0x8] sm:$0xff] }
  0xb8   : > { %656 = vmatmul.bf16.gmra.mxu1 %v1184_v63  ;;  %676 = vmatmul.bf16.gmra.mxu3 %v1216_v0 }
 0x104   : > { %v593_v1 = vpop.f32.mrf.mxu0 }
 0x105   : > { %v642_v3 = vpop.f32.mrf.mxu1 }
 0x106   : > { %v643_v4 = vadd.f32 %v642_v3, %v593_v1  ;;  %v358_v3 = vld [vmem:[#allocation2 + $0x78] sm:$0xff] }
 0x108   : > { %v682_v5 = vadd.f32 %v643_v4, %v344_v2 }
 0x10a   : > { %698 = vst [vmem:[#allocation2 + $0x30] sm:$0xff] %v682_v5  ;;  %v613_v6 = vpop.f32.mrf.mxu2 }
 0x10b   : > { %v662_v8 = vpop.f32.mrf.mxu3 }
 0x10c   : > { %v663_v9 = vadd.f32 %v662_v8, %v613_v6  ;;  %v595_v10 = vpop.f32.mrf.mxu0 }
 0x10d   : > { %v644_v12 = vpop.f32.mrf.mxu1 }
 0x10e   : > { %v690_v13 = vadd.f32 %v663_v9, %v352_v7  ;;  %v645_v14 = vadd.f32 %v644_v12, %v595_v10  ;;  %v351_v7 = vld [vmem:[#allocation2 + $0x48] sm:$0xff] }
 0x110   : > { %706 = vst [vmem:[#allocation2 + $0x40] sm:$0xff] %v690_v13  ;;  %v683_v15 = vadd.f32 %v645_v14, %v345_v11  ;;  %v359_v13 = vld [vmem:[#allocation2 + $0x28] sm:$0xff] }
 0x112   : > { %699 = vst [vmem:[#allocation2] sm:$0xff] %v683_v15  ;;  %v615_v16 = vpop.f32.mrf.mxu2 }
 0x113   : > { %v664_v18 = vpop.f32.mrf.mxu3 }
 0x114   : > { %v665_v19 = vadd.f32 %v664_v18, %v615_v16  ;;  %v598_v20 = vpop.f32.mrf.mxu0 }
 0x115   : > { %v647_v22 = vpop.f32.mrf.mxu1 }
 0x116   : > { %v691_v23 = vadd.f32 %v665_v19, %v353_v17  ;;  %v648_v24 = vadd.f32 %v647_v22, %v598_v20 }
 0x118   : > { %707 = vst [vmem:[#allocation2 + $0x20] sm:$0xff] %v691_v23  ;;  %v684_v25 = vadd.f32 %v648_v24, %v346_v21 }
 0x11a   : > { %700 = vst [vmem:[#allocation2 + $0x58] sm:$0xff] %v684_v25  ;;  %v618_v26 = vpop.f32.mrf.mxu2 }
 0x11b   : > { %v667_v28 = vpop.f32.mrf.mxu3 }
 0x11c   : > { %v668_v29 = vadd.f32 %v667_v28, %v618_v26  ;;  %v600_v30 = vpop.f32.mrf.mxu0 }
 0x11d   : > { %v649_v32 = vpop.f32.mrf.mxu1 }
 0x11e   : > { %v692_v33 = vadd.f32 %v668_v29, %v354_v27  ;;  %v650_v34 = vadd.f32 %v649_v32, %v600_v30 }
 0x120   : > { %708 = vst [vmem:[#allocation2 + $0x10] sm:$0xff] %v692_v33  ;;  %v685_v35 = vadd.f32 %v650_v34, %v347_v31 }
 0x122   : > { %701 = vst [vmem:[#allocation2 + $0x18] sm:$0xff] %v685_v35  ;;  %v620_v36 = vpop.f32.mrf.mxu2 }
 0x123   : > { %v669_v38 = vpop.f32.mrf.mxu3 }
 0x124   : > { %v670_v39 = vadd.f32 %v669_v38, %v620_v36  ;;  %v603_v40 = vpop.f32.mrf.mxu0 }
 0x125   : > { %v652_v42 = vpop.f32.mrf.mxu1 }
 0x126   : > { %v693_v43 = vadd.f32 %v670_v39, %v355_v37  ;;  %v653_v44 = vadd.f32 %v652_v42, %v603_v40 }
 0x128   : > { %709 = vst [vmem:[#allocation2 + $0x38] sm:$0xff] %v693_v43  ;;  %v686_v45 = vadd.f32 %v653_v44, %v348_v41 }
 0x12a   : > { %702 = vst [vmem:[#allocation2 + $0x50] sm:$0xff] %v686_v45  ;;  %v623_v46 = vpop.f32.mrf.mxu2 }
 0x12b   : > { %v672_v48 = vpop.f32.mrf.mxu3 }
 0x12c   : > { %v673_v49 = vadd.f32 %v672_v48, %v623_v46  ;;  %v605_v50 = vpop.f32.mrf.mxu0 }
 0x12d   : > { %v654_v52 = vpop.f32.mrf.mxu1 }
 0x12e   : > { %v694_v53 = vadd.f32 %v673_v49, %v356_v47  ;;  %v655_v54 = vadd.f32 %v654_v52, %v605_v50 }
 0x130   : > { %710 = vst [vmem:[#allocation2 + $0x60] sm:$0xff] %v694_v53  ;;  %v687_v55 = vadd.f32 %v655_v54, %v349_v51 }
 0x132   : > { %703 = vst [vmem:[#allocation2 + $0x68] sm:$0xff] %v687_v55  ;;  %v625_v56 = vpop.f32.mrf.mxu2 }
 0x133   : > { %v674_v58 = vpop.f32.mrf.mxu3 }
 0x134   : > { %v675_v59 = vadd.f32 %v674_v58, %v625_v56  ;;  %v608_v60 = vpop.f32.mrf.mxu0 }
 0x135   : > { %v657_v62 = vpop.f32.mrf.mxu1 }
 0x136   : > { %v695_v63 = vadd.f32 %v675_v59, %v357_v57  ;;  %v658_v0 = vadd.f32 %v657_v62, %v608_v60 }
 0x138   : > { %711 = vst [vmem:[#allocation2 + $0x70] sm:$0xff] %v695_v63  ;;  %v688_v1 = vadd.f32 %v658_v0, %v350_v61 }
 0x13a   : > { %704 = vst [vmem:[#allocation2 + $0x8] sm:$0xff] %v688_v1  ;;  %v628_v2 = vpop.f32.mrf.mxu2 }
 0x13b   : > { %v677_v4 = vpop.f32.mrf.mxu3 }
 0x13c   : > { %v678_v5 = vadd.f32 %v677_v4, %v628_v2  ;;  %v610_v6 = vpop.f32.mrf.mxu0 }
 0x13d   : > { %v659_v8 = vpop.f32.mrf.mxu1 }
 0x13e   : > { %v696_v9 = vadd.f32 %v678_v5, %v358_v3  ;;  %v660_v10 = vadd.f32 %v659_v8, %v610_v6 }
 0x140   : > { %712 = vst [vmem:[#allocation2 + $0x78] sm:$0xff] %v696_v9  ;;  %v689_v11 = vadd.f32 %v660_v10, %v351_v7 }
 0x142   : > { %705 = vst [vmem:[#allocation2 + $0x48] sm:$0xff] %v689_v11  ;;  %v630_v12 = vpop.f32.mrf.mxu2 }
 0x143   : > { %v679_v14 = vpop.f32.mrf.mxu3 }
 0x144   : > { %v680_v15 = vadd.f32 %v679_v14, %v630_v12  ;;  %717 = sbr.rel (%p1281_p0) target bundleno = 667 (0x29b), region = 60 }
 0x146   : > { %v697_v16 = vadd.f32 %v680_v15, %v359_v13 }
 0x148   : > { %713 = vst [vmem:[#allocation2 + $0x28] sm:$0xff] %v697_v16 }
 0x149   : > { %v749_v17 = vld [vmem:[#allocation8 + $0x78] sm:$0xff]  ;;  %v748_v18 = vld [vmem:[#allocation8 + $0x70] sm:$0xff]  ;;  %v747_v19 = vld [vmem:[#allocation8 + $0x68] sm:$0xff] }
 0x14a   : > { %754 = vmatpush.msra.mxu0 %v749_v17  ;;  %1384 = vmatpush.msra.mxu1 %v749_v17  ;;  %v746_v20 = vld [vmem:[#allocation8 + $0x60] sm:$0xff]  ;;  %v745_v21 = vld [vmem:[#allocation8 + $0x58] sm:$0xff]  ;;  %v744_v22 = vld [vmem:[#allocation8 + $0x50] sm:$0xff] }
 0x14b   : > { %1385 = vmatpush.msra.mxu2 %v749_v17  ;;  %1386 = vmatpush.msra.mxu3 %v749_v17  ;;  %v743_v23 = vld [vmem:[#allocation8 + $0x48] sm:$0xff]  ;;  %v742_v24 = vld [vmem:[#allocation8 + $0x40] sm:$0xff]  ;;  %v741_v25 = vld [vmem:[#allocation8 + $0x38] sm:$0xff] }
 0x14c   : > { %755 = vmatpush.msra.mxu0 %v748_v18  ;;  %1387 = vmatpush.msra.mxu1 %v748_v18  ;;  %v740_v26 = vld [vmem:[#allocation8 + $0x30] sm:$0xff]  ;;  %v739_v27 = vld [vmem:[#allocation8 + $0x28] sm:$0xff]  ;;  %v738_v28 = vld [vmem:[#allocation8 + $0x20] sm:$0xff] }
 0x14d   : > { %1388 = vmatpush.msra.mxu2 %v748_v18  ;;  %1389 = vmatpush.msra.mxu3 %v748_v18  ;;  %v737_v29 = vld [vmem:[#allocation8 + $0x18] sm:$0xff]  ;;  %v736_v30 = vld [vmem:[#allocation8 + $0x10] sm:$0xff]  ;;  %v735_v31 = vld [vmem:[#allocation8 + $0x8] sm:$0xff] }
 0x14e   : > { %756 = vmatpush.msra.mxu0 %v747_v19  ;;  %1390 = vmatpush.msra.mxu1 %v747_v19  ;;  %v734_v32 = vld [vmem:[#allocation8] sm:$0xff]  ;;  %v718_v33 = vld [vmem:[#allocation2 + $0x30] sm:$0xff]  ;;  %v723_v39 = vld [vmem:[#allocation2 + $0x68] sm:$0xff] }
 0x14f   : > { %1391 = vmatpush.msra.mxu2 %v747_v19  ;;  %1392 = vmatpush.msra.mxu3 %v747_v19  ;;  %v722_v34 = vld [vmem:[#allocation2 + $0x50] sm:$0xff]  ;;  %v726_v35 = vld [vmem:[#allocation2 + $0x40] sm:$0xff]  ;;  %v720_v41 = vld [vmem:[#allocation2 + $0x58] sm:$0xff] }
 0x150   : > { %757 = vmatpush.msra.mxu0 %v746_v20  ;;  %1393 = vmatpush.msra.mxu1 %v746_v20  ;;  %v730_v36 = vld [vmem:[#allocation2 + $0x60] sm:$0xff]  ;;  %v731_v40 = vld [vmem:[#allocation2 + $0x70] sm:$0xff]  ;;  %v724_v43 = vld [vmem:[#allocation2 + $0x8] sm:$0xff] }
 0x151   : > { %1394 = vmatpush.msra.mxu2 %v746_v20  ;;  %1395 = vmatpush.msra.mxu3 %v746_v20  ;;  %v719_v37 = vld [vmem:[#allocation2] sm:$0xff]  ;;  %v728_v42 = vld [vmem:[#allocation2 + $0x10] sm:$0xff]  ;;  %v732_v44 = vld [vmem:[#allocation2 + $0x78] sm:$0xff] }
 0x152   : > { %758 = vmatpush.msra.mxu0 %v745_v21  ;;  %1396 = vmatpush.msra.mxu1 %v745_v21  ;;  %v727_v38 = vld [vmem:[#allocation2 + $0x20] sm:$0xff]  ;;  %v721_v45 = vld [vmem:[#allocation2 + $0x18] sm:$0xff]  ;;  %v725_v47 = vld [vmem:[#allocation2 + $0x48] sm:$0xff] }
 0x153   : > { %1397 = vmatpush.msra.mxu2 %v745_v21  ;;  %1398 = vmatpush.msra.mxu3 %v745_v21  ;;  %v729_v46 = vld [vmem:[#allocation2 + $0x38] sm:$0xff]  ;;  %v733_v48 = vld [vmem:[#allocation2 + $0x28] sm:$0xff]  ;;  %v2129_v49 = vld [vmem:[%s2361_s9] ss:$0 sm:$0xff] }
 0x154   : > { %759 = vmatpush.msra.mxu0 %v744_v22  ;;  %1399 = vmatpush.msra.mxu1 %v744_v22  ;;  %v2134_v50 = vld [vmem:[%s2362_s20] ss:$0 sm:$0xff] }
 0x155   : > { %1400 = vmatpush.msra.mxu2 %v744_v22  ;;  %1401 = vmatpush.msra.mxu3 %v744_v22 }
 0x156   : > { %760 = vmatpush.msra.mxu0 %v743_v23  ;;  %1402 = vmatpush.msra.mxu1 %v743_v23 }
 0x157   : > { %1403 = vmatpush.msra.mxu2 %v743_v23  ;;  %1404 = vmatpush.msra.mxu3 %v743_v23 }
 0x158   : > { %761 = vmatpush.msra.mxu0 %v742_v24  ;;  %1405 = vmatpush.msra.mxu1 %v742_v24 }
 0x159   : > { %1406 = vmatpush.msra.mxu2 %v742_v24  ;;  %1407 = vmatpush.msra.mxu3 %v742_v24 }
 0x15a   : > { %762 = vmatpush.msra.mxu0 %v741_v25  ;;  %1408 = vmatpush.msra.mxu1 %v741_v25 }
 0x15b   : > { %1409 = vmatpush.msra.mxu2 %v741_v25  ;;  %1410 = vmatpush.msra.mxu3 %v741_v25 }
 0x15c   : > { %763 = vmatpush.msra.mxu0 %v740_v26  ;;  %1411 = vmatpush.msra.mxu1 %v740_v26 }
 0x15d   : > { %1412 = vmatpush.msra.mxu2 %v740_v26  ;;  %1413 = vmatpush.msra.mxu3 %v740_v26 }
 0x15e   : > { %764 = vmatpush.msra.mxu0 %v739_v27  ;;  %1414 = vmatpush.msra.mxu1 %v739_v27 }
 0x15f   : > { %1415 = vmatpush.msra.mxu2 %v739_v27  ;;  %1416 = vmatpush.msra.mxu3 %v739_v27 }
 0x160   : > { %765 = vmatpush.msra.mxu0 %v738_v28  ;;  %1417 = vmatpush.msra.mxu1 %v738_v28 }
 0x161   : > { %1418 = vmatpush.msra.mxu2 %v738_v28  ;;  %1419 = vmatpush.msra.mxu3 %v738_v28 }
 0x162   : > { %766 = vmatpush.msra.mxu0 %v737_v29  ;;  %1420 = vmatpush.msra.mxu1 %v737_v29 }
 0x163   : > { %1421 = vmatpush.msra.mxu2 %v737_v29  ;;  %1422 = vmatpush.msra.mxu3 %v737_v29 }
 0x164   : > { %767 = vmatpush.msra.mxu0 %v736_v30  ;;  %1423 = vmatpush.msra.mxu1 %v736_v30 }
 0x165   : > { %1424 = vmatpush.msra.mxu2 %v736_v30  ;;  %1425 = vmatpush.msra.mxu3 %v736_v30 }
 0x166   : > { %768 = vmatpush.msra.mxu0 %v735_v31  ;;  %1426 = vmatpush.msra.mxu1 %v735_v31 }
 0x167   : > { %1427 = vmatpush.msra.mxu2 %v735_v31  ;;  %1428 = vmatpush.msra.mxu3 %v735_v31 }
 0x168   : > { %769 = vmatpush.msra.mxu0 %v734_v32  ;;  %1429 = vmatpush.msra.mxu1 %v734_v32 }
 0x169   : > { %1430 = vmatpush.msra.mxu2 %v734_v32  ;;  %770 = vmatmul.f32.vlgmr.msra.gmra.mxu0 %v718_v33 }
 0x16a   : > { %782 = vmatmul.f32.vlgmr.msra.gmra.mxu1 %v722_v34  ;;  %794 = vmatmul.f32.vlgmr.msra.gmra.mxu2 %v726_v35 }
 0x16b   : > { %1431 = vmatpush.msra.mxu3 %v734_v32 }
 0x16c   : > { %806 = vmatmul.f32.vlgmr.msra.gmra.mxu3 %v730_v36 }
 0x171   : > { %773 = vmatmul.f32.gmra.mxu0 %v719_v37 }
 0x172   : > { %797 = vmatmul.f32.gmra.mxu2 %v727_v38  ;;  %785 = vmatmul.f32.gmra.mxu1 %v723_v39 }
 0x174   : > { %809 = vmatmul.f32.gmra.mxu3 %v731_v40 }
 0x179   : > { %776 = vmatmul.f32.gmra.mxu0 %v720_v41 }
 0x17a   : > { %800 = vmatmul.f32.gmra.mxu2 %v728_v42  ;;  %788 = vmatmul.f32.gmra.mxu1 %v724_v43 }
 0x17c   : > { %812 = vmatmul.f32.gmra.mxu3 %v732_v44 }
 0x181   : > { %779 = vmatmul.f32.gmra.mxu0 %v721_v45 }
 0x182   : > { %803 = vmatmul.f32.gmra.mxu2 %v729_v46  ;;  %791 = vmatmul.f32.gmra.mxu1 %v725_v47 }
 0x184   : > { %815 = vmatmul.f32.gmra.mxu3 %v733_v48 }
 0x1e6   : > { %v771_v51 = vpop.f32.mrf.mxu0 }
 0x1e7   : > { %v2137_v52 = vadd.f32 %v2129_v49, %v771_v51  ;;  %v783_v53 = vpop.f32.mrf.mxu1 }
 0x1e8   : > { %v2140_v54 = vadd.f32 %v2129_v49, %v783_v53 }
 0x1e9   : > { %v823_v55 = vmul.f32 %v2134_v50, %v2137_v52 }
 0x1ea   : > { %v827_v56 = vmul.f32 %v2134_v50, %v2140_v54 }
 0x1eb   : > { %839 = vadd.xlane.f32.xlu0 %v823_v55 }
 0x1ec   : > { %847 = vadd.xlane.f32.xlu2 %v827_v56 }
 0x1ed   : > { %v795_v57 = vpop.f32.mrf.mxu2 }
 0x1ee   : > { %v2147_v58 = vadd.f32 %v2129_v49, %v795_v57  ;;  %v774_v59 = vpop.f32.mrf.mxu0 }
 0x1ef   : > { %v807_v60 = vpop.f32.mrf.mxu3  ;;  %v786_v63 = vpop.f32.mrf.mxu1  ;;  %v2160_v3 = vadd.f32 %v2129_v49, %v774_v59 }
 0x1f0   : > { %v2150_v61 = vadd.f32 %v2129_v49, %v807_v60  ;;  %v831_v62 = vmul.f32 %v2134_v50, %v2147_v58  ;;  %v2157_v1 = vadd.f32 %v2129_v49, %v786_v63 }
 0x1f1   : > { %v824_v9 = vmul.f32 %v2134_v50, %v2160_v3 }
 0x1f2   : > { %v835_v0 = vmul.f32 %v2134_v50, %v2150_v61  ;;  %v828_v7 = vmul.f32 %v2134_v50, %v2157_v1 }
 0x1f4   : > { %855 = vadd.xlane.f32.xlu2 %v831_v62  ;;  %863 = vadd.xlane.f32.xlu0 %v835_v0 }
 0x1f5   : > { %v798_v2 = vpop.f32.mrf.mxu2 }
 0x1f6   : > { %v777_v4 = vpop.f32.mrf.mxu0  ;;  %v2172_v11 = vadd.f32 %v2129_v49, %v798_v2 }
 0x1f7   : > { %v2163_v5 = vadd.f32 %v2129_v49, %v777_v4  ;;  %v810_v6 = vpop.f32.mrf.mxu3  ;;  %v789_v13 = vpop.f32.mrf.mxu1 }
 0x1f8   : > { %v832_v17 = vmul.f32 %v2134_v50, %v2172_v11  ;;  %v2185_v19 = vadd.f32 %v2129_v49, %v789_v13  ;;  %v2212_v33 = vadd.f32 %v2129_v49, %v810_v6 }
 0x1f9   : > { %v825_v8 = vmul.f32 %v2134_v50, %v2163_v5 }
 0x1fa   : > { %v829_v24 = vmul.f32 %v2134_v50, %v2185_v19  ;;  %v836_v34 = vmul.f32 %v2134_v50, %v2212_v33 }
 0x1fb   : > { %843 = vadd.xlane.f32.xlu1 %v825_v8 }
 0x1fc   : > { %849 = vadd.xlane.f32.xlu2 %v828_v7  ;;  %841 = vadd.xlane.f32.xlu0 %v824_v9 }
 0x1fd   : > { %v801_v10 = vpop.f32.mrf.mxu2 }
 0x1fe   : > { %v2175_v12 = vadd.f32 %v2129_v49, %v801_v10  ;;  %v780_v16 = vpop.f32.mrf.mxu0 }
 0x1ff   : > { %v813_v14 = vpop.f32.mrf.mxu3  ;;  %v2182_v18 = vadd.f32 %v2129_v49, %v780_v16  ;;  %v792_v25 = vpop.f32.mrf.mxu1 }
 0x200   : > { %v833_v15 = vmul.f32 %v2134_v50, %v2175_v12  ;;  %v2197_v27 = vadd.f32 %v2129_v49, %v813_v14  ;;  %v2200_v28 = vadd.f32 %v2129_v49, %v792_v25 }
 0x201   : > { %v826_v22 = vmul.f32 %v2134_v50, %v2182_v18 }
 0x202   : > { %v837_v30 = vmul.f32 %v2134_v50, %v2197_v27  ;;  %v830_v31 = vmul.f32 %v2134_v50, %v2200_v28 }
 0x203   : > { %859 = vadd.xlane.f32.xlu1 %v833_v15 }
 0x204   : > { %857 = vadd.xlane.f32.xlu0 %v832_v17 }
 0x205   : > { %v804_v20 = vpop.f32.mrf.mxu2 }
 0x206   : > { %v2188_v21 = vadd.f32 %v2129_v49, %v804_v20 }
 0x207   : > { %v816_v26 = vpop.f32.mrf.mxu3 }
 0x208   : > { %v834_v23 = vmul.f32 %v2134_v50, %v2188_v21  ;;  %v2203_v29 = vadd.f32 %v2129_v49, %v816_v26 }
 0x20a   : > { %861 = vadd.xlane.f32.xlu2 %v834_v23  ;;  %v838_v32 = vmul.f32 %v2134_v50, %v2203_v29 }
 0x20b   : > { %845 = vadd.xlane.f32.xlu1 %v826_v22 }
 0x20c   : > { %851 = vadd.xlane.f32.xlu0 %v829_v24 }
 0x212   : > { %867 = vadd.xlane.f32.xlu2 %v837_v30 }
 0x213   : > { %853 = vadd.xlane.f32.xlu1 %v830_v31 }
 0x214   : > { %869 = vadd.xlane.f32.xlu0 %v838_v32 }
 0x21b   : > { %865 = vadd.xlane.f32.xlu1 %v836_v34 }
 0x25e   : > { %v840_v35 = vpop.xlane.xlu0 %839 }
 0x25f   : > { %v848_v36 = vpop.xlane.xlu2 %847  ;;  %v887_v38 = vmul.f32 0.2, %v840_v35  ;;  %vm871_vm1 = vcmp.ge.f32.partialorder %v840_v35, 0.0 }
 0x260   : > { %v891_v37 = vmul.f32 0.2, %v848_v36  ;;  %vm875_vm0 = vcmp.ge.f32.partialorder %v848_v36, 0.0 }
 0x261   : > { %v903_v42 = vsel %vm871_vm1, %v840_v35, %v887_v38 }
 0x262   : > { %v907_v41 = vsel %vm875_vm0, %v848_v36, %v891_v37  ;;  %v919_v44 = vmax.f32 %v903_v42, 0.0 }
 0x263   : > { %v923_v43 = vmax.f32 %v907_v41, 0.0 }
 0x264   : > { %v935_v53 = vmin.f32 %v919_v44, 5.0 }
 0x265   : > { %v939_v51 = vmin.f32 %v923_v43, 5.0 }
 0x266   : > { %v951_v4 = vmul.f32 %v935_v53, %v2137_v52 }
 0x267   : > { %v856_v39 = vpop.xlane.xlu2 %855  ;;  %v2216_v40 = vpop.xlane.xlu0 %863  ;;  %v955_v2 = vmul.f32 %v939_v51, %v2140_v54 }
 0x268   : > { %vm879_vm2 = vcmp.ge.f32.partialorder %v856_v39, 0.0  ;;  %v895_v46 = vmul.f32 0.2, %v856_v39  ;;  %vm883_vm11 = vcmp.ge.f32.partialorder %v2216_v40, 0.0 }
 0x26a   : > { %v911_v57 = vsel %vm879_vm2, %v856_v39, %v895_v46 }
 0x26b   : > { %v927_v6 = vmax.f32 %v911_v57, 0.0 }
 0x26d   : > { %v943_v52 = vmin.f32 %v927_v6, 5.0 }
 0x26e   : > { %v844_v45 = vpop.xlane.xlu1 %843 }
 0x26f   : > { %v850_v47 = vpop.xlane.xlu2 %849  ;;  %v842_v48 = vpop.xlane.xlu0 %841  ;;  %v889_v63 = vmul.f32 0.2, %v844_v45  ;;  %vm873_vm5 = vcmp.ge.f32.partialorder %v844_v45, 0.0  ;;  %v959_v30 = vmul.f32 %v943_v52, %v2147_v58 }
 0x270   : > { %vm876_vm3 = vcmp.ge.f32.partialorder %v850_v47, 0.0  ;;  %v892_v49 = vmul.f32 0.2, %v850_v47  ;;  %vm872_vm4 = vcmp.ge.f32.partialorder %v842_v48, 0.0  ;;  %v888_v50 = vmul.f32 0.2, %v842_v48 }
 0x271   : > { %v905_v16 = vsel %vm873_vm5, %v844_v45, %v889_v63 }
 0x272   : > { %v908_v55 = vsel %vm876_vm3, %v850_v47, %v892_v49  ;;  %v904_v56 = vsel %vm872_vm4, %v842_v48, %v888_v50  ;;  %v921_v23 = vmax.f32 %v905_v16, 0.0 }
 0x273   : > { %v924_v59 = vmax.f32 %v908_v55, 0.0  ;;  %v920_v60 = vmax.f32 %v904_v56, 0.0  ;;  %v899_v55 = vmul.f32 0.2, %v2216_v40 }
 0x274   : > { %v937_v35 = vmin.f32 %v921_v23, 5.0 }
 0x275   : > { %v940_v62 = vmin.f32 %v924_v59, 5.0  ;;  %v936_v0 = vmin.f32 %v920_v60, 5.0 }
 0x276   : > { %v860_v7 = vpop.xlane.xlu1 %859  ;;  %v953_v58 = vmul.f32 %v937_v35, %v2163_v5 }
 0x277   : > { %v956_v8 = vmul.f32 %v940_v62, %v2157_v1  ;;  %v952_v9 = vmul.f32 %v936_v0, %v2160_v3  ;;  %vm881_vm6 = vcmp.ge.f32.partialorder %v860_v7, 0.0  ;;  %v897_v10 = vmul.f32 0.2, %v860_v7  ;;  %v858_v13 = vpop.xlane.xlu0 %857 }
 0x278   : > { %vm880_vm7 = vcmp.ge.f32.partialorder %v858_v13, 0.0  ;;  %v896_v14 = vmul.f32 0.2, %v858_v13 }
 0x279   : > { %v1334_v15 = vpack.c.bf16 %v956_v8, %v955_v2  ;;  %v1324_v17 = vpack.c.bf16 %v952_v9, %v951_v4  ;;  %v913_v54 = vsel %vm881_vm6, %v860_v7, %v897_v10  ;;  %v915_v2 = vsel %vm883_vm11, %v2216_v40, %v899_v55 }
 0x27a   : > { %v912_v20 = vsel %vm880_vm7, %v858_v13, %v896_v14  ;;  %v929_v24 = vmax.f32 %v913_v54, 0.0  ;;  %v931_v9 = vmax.f32 %v915_v2, 0.0 }
 0x27b   : > { %1362 = vst [vmem:[%s2074_s16 + $0x10] sm:$0xff] %v1334_v15   ;;  %v928_v22 = vmax.f32 %v912_v20, 0.0 }
 0x27c   : > { %1325 = vst [vmem:[%s2074_s16] sm:$0xff] %v1324_v17   ;;  %v945_v38 = vmin.f32 %v929_v24, 5.0  ;;  %v947_v52 = vmin.f32 %v931_v9, 5.0 }
 0x27d   : > { %v944_v1 = vmin.f32 %v928_v22, 5.0  ;;  %v862_v25 = vpop.xlane.xlu2 %861 }
 0x27e   : > { %vm882_vm8 = vcmp.ge.f32.partialorder %v862_v25, 0.0  ;;  %v898_v3 = vmul.f32 0.2, %v862_v25  ;;  %v846_v26 = vpop.xlane.xlu1 %845 }
 0x27f   : > { %v960_v31 = vmul.f32 %v944_v1, %v2172_v11  ;;  %vm874_vm9 = vcmp.ge.f32.partialorder %v846_v26, 0.0  ;;  %v890_v32 = vmul.f32 0.2, %v846_v26  ;;  %v852_v34 = vpop.xlane.xlu0 %851  ;;  %v961_v11 = vmul.f32 %v945_v38, %v2175_v12 }
 0x280   : > { %v914_v36 = vsel %vm882_vm8, %v862_v25, %v898_v3  ;;  %vm877_vm10 = vcmp.ge.f32.partialorder %v852_v34, 0.0  ;;  %v893_v37 = vmul.f32 0.2, %v852_v34 }
 0x281   : > { %v1344_v39 = vpack.c.bf16 %v960_v31, %v959_v30  ;;  %v930_v41 = vmax.f32 %v914_v36, 0.0  ;;  %v906_v42 = vsel %vm874_vm9, %v846_v26, %v890_v32 }
 0x282   : > { %v922_v43 = vmax.f32 %v906_v42, 0.0  ;;  %v909_v45 = vsel %vm877_vm10, %v852_v34, %v893_v37 }
 0x283   : > { %1364 = vst [vmem:[%s2074_s16 + $0x20] sm:$0xff] %v1344_v39   ;;  %v946_v44 = vmin.f32 %v930_v41, 5.0  ;;  %v925_v50 = vmax.f32 %v909_v45, 0.0 }
 0x284   : > { %v938_v46 = vmin.f32 %v922_v43, 5.0 }
 0x285   : > { %v962_v47 = vmul.f32 %v946_v44, %v2188_v21  ;;  %v868_v48 = vpop.xlane.xlu2 %867 }
 0x286   : > { %v954_v49 = vmul.f32 %v938_v46, %v2182_v18  ;;  %vm885_vm12 = vcmp.ge.f32.partialorder %v868_v48, 0.0  ;;  %v901_v51 = vmul.f32 0.2, %v868_v48  ;;  %v854_v53 = vpop.xlane.xlu1 %853  ;;  %v941_v18 = vmin.f32 %v925_v50, 5.0 }
 0x287   : > { %v1349_v56 = vpack.c.bf16 %v962_v47, %v961_v11  ;;  %vm878_vm13 = vcmp.ge.f32.partialorder %v854_v53, 0.0  ;;  %v894_v57 = vmul.f32 0.2, %v854_v53  ;;  %v870_v59 = vpop.xlane.xlu0 %869 }
 0x288   : > { %v1329_v5 = vpack.c.bf16 %v954_v49, %v953_v58  ;;  %v917_v60 = vsel %vm885_vm12, %v868_v48, %v901_v51  ;;  %vm886_vm14 = vcmp.ge.f32.partialorder %v870_v59, 0.0  ;;  %v902_v12 = vmul.f32 0.2, %v870_v59 }
 0x289   : > { %1365 = vst [vmem:[%s2074_s16 + $0x28] sm:$0xff] %v1349_v56   ;;  %v933_v21 = vmax.f32 %v917_v60, 0.0  ;;  %v910_v62 = vsel %vm878_vm13, %v854_v53, %v894_v57  ;;  %v957_v10 = vmul.f32 %v941_v18, %v2185_v19  ;;  %v963_v19 = vmul.f32 %v947_v52, %v2150_v61 }
 0x28a   : > { %1361 = vst [vmem:[%s2074_s16 + $0x8] sm:$0xff] %v1329_v5   ;;  %v926_v63 = vmax.f32 %v910_v62, 0.0  ;;  %v918_v0 = vsel %vm886_vm14, %v870_v59, %v902_v12 }
 0x28b   : > { %v949_v4 = vmin.f32 %v933_v21, 5.0  ;;  %v934_v6 = vmax.f32 %v918_v0, 0.0 }
 0x28c   : > { %v942_v7 = vmin.f32 %v926_v63, 5.0 }
 0x28d   : > { %v950_v8 = vmin.f32 %v934_v6, 5.0  ;;  %v965_v15 = vmul.f32 %v949_v4, %v2197_v27 }
 0x28e   : > { %v958_v13 = vmul.f32 %v942_v7, %v2200_v28  ;;  %v866_v14 = vpop.xlane.xlu1 %865 }
 0x28f   : > { %v966_v16 = vmul.f32 %v950_v8, %v2203_v29  ;;  %vm884_vm15 = vcmp.ge.f32.partialorder %v866_v14, 0.0  ;;  %v900_v17 = vmul.f32 0.2, %v866_v14 }
 0x290   : > { %v1339_v40 = vpack.c.bf16 %v958_v13, %v957_v10 }
 0x291   : > { %v1359_v54 = vpack.c.bf16 %v966_v16, %v965_v15  ;;  %v916_v20 = vsel %vm884_vm15, %v866_v14, %v900_v17 }
 0x292   : > { %1363 = vst [vmem:[%s2074_s16 + $0x18] sm:$0xff] %v1339_v40   ;;  %v932_v22 = vmax.f32 %v916_v20, 0.0 }
 0x293   : > { %1367 = vst [vmem:[%s2074_s16 + $0x38] sm:$0xff] %v1359_v54  }
 0x294   : > { %v948_v23 = vmin.f32 %v932_v22, 5.0 }
 0x296   : > { %v964_v28 = vmul.f32 %v948_v23, %v2212_v33 }
 0x298   : > { %v1354_v24 = vpack.c.bf16 %v964_v28, %v963_v19 }
 0x29a   : > { %1366 = vst [vmem:[%s2074_s16 + $0x30] sm:$0xff] %v1354_v24  }
 0x29b PF: > { %s2363_s26 = sld [smem:[#allocation17_spill]]  ;;  %s1012_s29 = sshll.u32 %s2074_s16, 4  ;;  %s1013_s29 = int_to_ptr.vmem [resolvable:$true] %s1012_s29 }
 0x29c   : > { %s2365_s14 = sld [smem:[#allocation29_spill]]  ;;  %s1000_s0 = scalar_lea.sflag [#allocation5], %s317_s8 }
 0x2a1   : > { %s1320_s24 = sshll.u32 %s2363_s26, 6 }
 0x2a2   : > { %s1011_s10 = scalar_lea.hbm %s2365_s14, %s1320_s24  ;;  %s1695_s13 = scalar_lea.hbm %s2365_s14, 128 }
 0x2a3   : > { %s1014_s5 = sshll.u32 %s1011_s10, 4  ;;  %s1015_s5 = int_to_ptr.hbm [resolvable:$true] %s1014_s5 }
 0x2a4   : > { %s1689_s3 = sshra.s32 %s1015_s5, 4  ;;  %s1690_s3 = int_to_ptr.hbm [resolvable:$true] %s1689_s3 }
 0x2a5   : > { %s1691_s4 = scalar_lea.hbm %s1690_s3, 64  ;;  %p1696_p12 = scmp.lt.s32.totalorder %s1690_s3, %s2365_s14 }
 0x2a6   : > { %p1692_p4 = scmp.ne.s32.totalorder %s1690_s3, %s1691_s4  ;;  %p1697_p1 = scmp.lt.s32.totalorder %s1695_s13, %s1691_s4 }
 0x2a8   : > { %p1693_p3 = pnand %p1692_p4, %p1955_p6  ;;  %p1698_p2 = por %p1697_p1, %p1696_p12 }
 0x2aa   : > { %p1694_p5 = pneg %p1693_p3 }
 0x2ac   : > { %p1699_p7 = pnand %p1698_p2, %p1694_p5 }
 0x2ae   : > { %1702 = shalt.err (!%p1699_p7)
}
 0x2af   : > { %s1838_s8 = smov 64   ;;  %s1839_s16 = smov 4  }
 0x2b0   : > { %1441 = dma.vmem_to_hbm [thread:$0]  (%p1955_p6), %s1013_s29, 1024, %s1015_s5, %s1000_s0, %s1838_s8, %s1838_s8, %s1839_s16  }
 0x2b1 PF: > { %s2366_s9 = sld [smem:[#allocation14_spill]]  ;;  %p1461_p8 = scmp.ge.s32.totalorder %s1829_s6, 2 }
 0x2b3   : > { %p1455_p9 = pnand %p1461_p8, %p1961_p10 }
 0x2b5   : > { %p1456_p13 = pneg %p1455_p9 }
 0x2b7   : > { %s1029_s2 = sand.u32 1, %s2366_s9  }
 0x2b8   : > { %s1030_s20 = scalar_lea.sflag [#allocation5], %s1029_s2 }
 0x2b9   : > { %1772 = dma.done.wait (%p1456_p13), %s1030_s20, 1024  }
 0x2ba   : > { %1774 = vsyncadd (%p1456_p13), %s1030_s20, 4294966272  ;;  %s24_s6 = sadd.s32 1, %s1829_s6   ;;  %s2369_s24 = sld [smem:[#allocation15_spill]] }
 0x2bb   : > { %p2269_p11 = scmp.ge.s32.totalorder %s24_s6, 8   ;;  %s2370_s20 = sld [smem:[#allocation24_spill]] }
 0x2bc   : > { %s2371_s11 = smov %s2037_s21  ;;  %s2372_s17 = sld [smem:[#allocation16_spill]] }
 0x2bd   : > { %s2373_s10 = sld [smem:[#allocation23_spill]]  ;;  %s2378_s18 = smov %s1781_s19 }
 0x2be   : > { %s2374_s27 = sld [smem:[#allocation18_spill]]  ;;  %s2380_s21 = smov %s1793_s22 }
 0x2bf   : > { %s2375_s29 = sld [smem:[#allocation21_spill]]  ;;  %s2381_s22 = smov %s1797_s23 }
 0x2c0   : > { %s2376_s5 = sld [smem:[#allocation22_spill]]  ;;  %s2379_s19 = smov %s2369_s24 }
 0x2c1   : > { %s2382_s23 = smov %s2371_s11  ;;  %s2383_s24 = smov %s1805_s25 }
 0x2c2   : > { %s2384_s25 = smov %s2372_s17  ;;  %s2386_s28 = smov %s1825_s30 }
 0x2c3   : > { %s2385_s26 = smov %s2373_s10  ;;  %23 = sbr.rel (!%p2269_p11) target bundleno = 18 (0x12), region = 110 }
 0x2c6   : > { %s2387_s30 = smov %s2376_s5 }
 0x2c8   :  { %1036 = vsyncpa [#allocation4], 1 }
 0x2c9   :  { %1038 = vsyncpa [#allocation4 + $0x1], 1 }
 0x2ca   :  { %1039 = vsyncpa [#allocation7], 1 }
 0x2cb   :  { %1041 = vsyncpa [#allocation7 + $0x1], 1 }
 0x2cc   :  { %1042 = vsyncpa [#allocation5], 1 }
 0x2cd   :  { %1044 = vsyncpa [#allocation5 + $0x1], 1 }

</bundles_post_ra>
